<compile_context>
chip_gen: v7x
topology: tpu7x:2x2x1
jax: 0.10.0
libtpu: 0.0.40
codegen_flags: <defaults>
</compile_context>

<pallas_src>
import numpy as np
import jax
import jax.numpy as jnp
from jax.experimental import pallas as pl
from jax.experimental.pallas import tpu as pltpu


_VMEM_LIMIT = 32 * 1024 * 1024  # fits v5e/v6e/v7x; well above worst-case working set here


# ----------------------------- numpy helpers (param setup) -----------------------------

def _hann_periodic(n):
    # scipy.signal.get_window('hann', n, fftbins=True)
    return 0.5 - 0.5 * np.cos(2.0 * np.pi * np.arange(n) / n)


def _pad_center(w, size):
    n = len(w)
    lpad = (size - n) // 2
    return np.pad(w, (lpad, size - n - lpad))


def _window_sumsquare(win_length, n_fft, hop_length, n_frames):
    # librosa.filters.window_sumsquare with norm=None, hann window
    n = n_fft + hop_length * (n_frames - 1)
    x = np.zeros(n, dtype=np.float32)
    win_sq = _hann_periodic(win_length).astype(np.float32) ** 2
    win_sq = _pad_center(win_sq, n_fft)
    for i in range(n_frames):
        sample = i * hop_length
        x[sample: min(n, sample + n_fft)] += win_sq[: max(0, min(n_fft, n - sample))]
    return x


def _round_up(x, m):
    return (x + m - 1) // m * m


def _choose_tile(n, mult, max_tile=256, min_steps=1):
    """Pick a tile size (multiple of `mult`, <= max_tile) minimizing padded work plus
    per-grid-step overhead, preferring >= min_steps steps along this axis."""
    max_tile = max(mult, (max_tile // mult) * mult)
    best_key, best_t = None, mult
    t = mult
    while t <= max_tile:
        steps = -(-n // t)
        padded = steps * t
        # ~128 rows is roughly one grid-step overhead worth of output bandwidth.
        key = (0 if steps >= min_steps else 1, padded + 128 * steps, -t)
        if best_key is None or key < best_key:
            best_key, best_t = key, t
        t += mult
    return best_t


# ----------------------------- Pallas kernels -----------------------------

def _make_forward_kernel(Np, R, tile_t, emit_mag):
    def kernel(cm_ref, ch_ref, basis_ref, real_ref, imag_ref, *maybe_mag):
        # Assemble (tile_t, L) frames from the non-duplicated hop-chunk layout:
        # frame t = [chunk t | chunk t+1 | ... | chunk t+R-1].
        main = cm_ref[0]                                   # (tile_t, hop) bf16
        halo = ch_ref[0]                                   # (H, hop) bf16
        full = jnp.concatenate([main, halo], axis=0)       # (tile_t + H, hop)
        frames = jnp.concatenate(
            [full[j:j + tile_t, :] for j in range(R)], axis=-1)   # (tile_t, L) bf16
        ri = jnp.dot(frames, basis_ref[...], preferred_element_type=jnp.float32)
        r = ri[:, :Np]
        im = ri[:, Np:]
        real_ref[0] = r.astype(real_ref.dtype)
        imag_ref[0] = im.astype(imag_ref.dtype)
        if emit_mag:
            maybe_mag[0][0] = jnp.sqrt(r * r + im * im)
    return kernel


def _make_inverse_kernel(L, fold, tile_t, from_ri):
    def kernel(a_ref, b_ref, wr_ref, wi_ref, out_ref):
        if from_ri:
            rc = a_ref[0].astype(jnp.bfloat16)             # real
            ic = b_ref[0].astype(jnp.bfloat16)             # imag
        else:
            mag = a_ref[0]
            ph = b_ref[0]
            # cos/sin (VPU/EUP) hide under the MXU / store path.
            rc = (mag * jnp.cos(ph)).astype(jnp.bfloat16)
            ic = (mag * jnp.sin(ph)).astype(jnp.bfloat16)
        # Two dots on the static real/imag halves of the inverse basis (no concat copy).
        y = (jnp.dot(rc, wr_ref[...], preferred_element_type=jnp.float32)
             + jnp.dot(ic, wi_ref[...], preferred_element_type=jnp.float32))
        # Lane-dense store: fold `fold` consecutive L-wide frames into one 128-wide row.
        out_ref[0] = y.reshape(tile_t // fold, fold * L)
    return kernel


# ----------------------------- STFT module -----------------------------

class STFTPallas:
    def __init__(self, filter_length=64, hop_length=16, win_length=64, window="hann",
                 use_pallas=True, max_tile=256):
        assert filter_length >= win_length
        # TODO(synk): hop lengths that do not divide filter_length would need a
        # gather-based frame path and a scatter-add overlap-add; not implemented here.
        assert filter_length % hop_length == 0
        self.filter_length = filter_length
        self.hop_length = hop_length
        self.win_length = win_length
        self.window = window
        self.use_pallas = use_pallas

        L = filter_length
        hop = hop_length
        cutoff = L // 2 + 1
        self.cutoff = cutoff
        scale = L / hop

        self._R = L // hop                                   # chunks per frame
        self._H = _round_up(max(self._R - 1, 1), 16)         # halo chunks (bf16 packing)
        # Fold factor making the inverse output 128-lane dense (L=64 -> 2 frames/row).
        self._fold = (128 // L) if (L < 128 and 128 % L == 0) else 1
        self._tile_step = int(np.lcm(np.lcm(16, 8 * self._fold), self._H))
        self._max_tile = max_tile

        fourier_basis = np.fft.fft(np.eye(L))
        fourier_basis = np.vstack(
            [np.real(fourier_basis[:cutoff, :]), np.imag(fourier_basis[:cutoff, :])]
        )  # (2C, L)
        forward_basis = fourier_basis.copy()                      # (2C, L)
        inverse_basis = np.linalg.pinv(scale * fourier_basis).T   # (2C, L)

        if window is not None:
            fft_window = _pad_center(_hann_periodic(win_length), L)  # (L,)
            forward_basis = forward_basis * fft_window[None, :]
            inverse_basis = inverse_basis * fft_window[None, :]

        # Frequency-bin padding to a lane-dense 128 multiple.
        Np = _round_up(cutoff, 128)
        self._Np = Np

        # Fused forward basis: (L, 2*Np) = [real | imag] along lanes, pre-cast to bf16.
        bf = np.zeros((L, 2 * Np), np.float32)
        bf[:, :cutoff] = forward_basis[:cutoff, :].T
        bf[:, Np:Np + cutoff] = forward_basis[cutoff:, :].T
        self.basis_fwd = jnp.asarray(bf, dtype=jnp.bfloat16)

        # Inverse basis as two static halves (Np, L), pre-cast to bf16.
        wr = np.zeros((Np, L), np.float32)
        wi = np.zeros((Np, L), np.float32)
        wr[:cutoff, :] = inverse_basis[:cutoff, :]
        wi[:cutoff, :] = inverse_basis[cutoff:, :]
        self.basis_inv_r = jnp.asarray(wr, dtype=jnp.bfloat16)
        self.basis_inv_i = jnp.asarray(wi, dtype=jnp.bfloat16)

        self._fwd_cache = None
        self._mag = None
        self._ph = None

    # ---------------- forward (frames assembled in-kernel) ----------------
    def _forward(self, input_data, emit_mag, filter_pad=True):
        L, hop, R, H = self.filter_length, self.hop_length, self._R, self._H
        B, _ = input_data.shape
        pad_len = (L if filter_pad else L - hop) // 2
        xp = jnp.pad(input_data, ((0, 0), (pad_len, pad_len)), mode="reflect")
        Sp = xp.shape[1]
        T = (Sp - L) // hop + 1
        Tc = T + R - 1

        min_steps = 1 if B >= 2 else 2        # keep both v7x TensorCores busy
        tile_t = _choose_tile(T, self._tile_step, self._max_tile, min_steps)
        Tp = _round_up(T, tile_t)

        # Non-duplicated hop-chunk layout of the padded signal, fed in bf16.
        chunks = xp[:, :Tc * hop].astype(jnp.bfloat16).reshape(B, Tc, hop)
        chunks = jnp.pad(chunks, ((0, 0), (0, Tp + H - Tc), (0, 0)))

        real_p, imag_p, mag_p = self._forward_matmul(chunks, Tp, tile_t, emit_mag)
        return real_p, imag_p, mag_p, B, T, tile_t

    def _forward_matmul(self, chunks, Tp, tile_t, emit_mag):
        B = chunks.shape[0]
        L, hop, Np, R, H = self.filter_length, self.hop_length, self._Np, self._R, self._H

        if not self.use_pallas:  # pure-JAX reference path (identical bf16 MXU math)
            frames = jnp.concatenate([chunks[:, j:j + Tp, :] for j in range(R)], axis=-1)
            ri = jnp.dot(frames, self.basis_fwd, preferred_element_type=jnp.float32)
            r, im = ri[..., :Np], ri[..., Np:]
            mag = jnp.sqrt(r * r + im * im) if emit_mag else None
            return r.astype(jnp.bfloat16), im.astype(jnp.bfloat16), mag

        nt = Tp // tile_t
        halo_blocks = tile_t // H
        blk = pl.BlockSpec((1, tile_t, Np), lambda b, i: (b, i, 0))
        out_shape = [jax.ShapeDtypeStruct((B, Tp, Np), jnp.bfloat16),
                     jax.ShapeDtypeStruct((B, Tp, Np), jnp.bfloat16)]
        out_specs = [blk, blk]
        if emit_mag:
            out_shape.append(jax.ShapeDtypeStruct((B, Tp, Np), jnp.float32))
            out_specs.append(blk)

        res = pl.pallas_call(
            _make_forward_kernel(Np, R, tile_t, emit_mag),
            out_shape=tuple(out_shape),
            grid=(B, nt),
            in_specs=[
                pl.BlockSpec((1, tile_t, hop), lambda b, i: (b, i, 0)),
                pl.BlockSpec((1, H, hop), lambda b, i: (b, (i + 1) * halo_blocks, 0)),
                pl.BlockSpec((L, 2 * Np), lambda b, i: (0, 0)),
            ],
            out_specs=tuple(out_specs),
            compiler_params=pltpu.CompilerParams(
                dimension_semantics=("parallel", "parallel"),
                vmem_limit_bytes=_VMEM_LIMIT),
        )(chunks, chunks, self.basis_fwd)
        if emit_mag:
            return res[0], res[1], res[2]
        return res[0], res[1], None

    # ---------------- inverse matmul (+ dense overlap-add) ----------------
    def _inverse_matmul(self, a_p, b_p, tile_t, from_ri):
        B, Tp, Np = a_p.shape
        L, fold = self.filter_length, self._fold

        if not self.use_pallas:  # pure-JAX reference path (identical bf16 MXU math)
            if from_ri:
                rc = a_p.astype(jnp.bfloat16)
                ic = b_p.astype(jnp.bfloat16)
            else:
                rc = (a_p * jnp.cos(b_p)).astype(jnp.bfloat16)
                ic = (a_p * jnp.sin(b_p)).astype(jnp.bfloat16)
            return (jnp.dot(rc, self.basis_inv_r, preferred_element_type=jnp.float32)
                    + jnp.dot(ic, self.basis_inv_i, preferred_element_type=jnp.float32))

        nt = Tp // tile_t
        folded = pl.pallas_call(
            _make_inverse_kernel(L, fold, tile_t, from_ri),
            out_shape=jax.ShapeDtypeStruct((B, Tp // fold, fold * L), jnp.float32),
            grid=(B, nt),
            in_specs=[
                pl.BlockSpec((1, tile_t, Np), lambda b, i: (b, i, 0)),
                pl.BlockSpec((1, tile_t, Np), lambda b, i: (b, i, 0)),
                pl.BlockSpec((Np, L), lambda b, i: (0, 0)),
                pl.BlockSpec((Np, L), lambda b, i: (0, 0)),
            ],
            out_specs=pl.BlockSpec((1, tile_t // fold, fold * L), lambda b, i: (b, i, 0)),
            compiler_params=pltpu.CompilerParams(
                dimension_semantics=("parallel", "parallel"),
                vmem_limit_bytes=_VMEM_LIMIT),
        )(a_p, b_p, self.basis_inv_r, self.basis_inv_i)
        return folded.reshape(B, Tp, L)

    def _finish_inverse(self, contrib, B, T):
        # contrib: (B, T, L) per-frame outputs -> dense overlap-add (no XLA scatter).
        L, hop, R = self.filter_length, self.hop_length, self._R
        out_len = (T - 1) * hop + L
        contrib_r = contrib.reshape(B, T, R, hop)
        acc = jnp.pad(contrib_r[:, :, 0, :], ((0, 0), (0, R - 1), (0, 0)))
        for j in range(1, R):
            acc = acc + jnp.pad(contrib_r[:, :, j, :], ((0, 0), (j, R - 1 - j), (0, 0)))
        inverse_transform = acc.reshape(B, out_len)[:, None, :]   # (B, 1, out_len)

        if self.window is not None:
            ws = _window_sumsquare(self.win_length, L, hop, T)
            tiny = np.finfo(np.float32).tiny
            inv_ws = np.where(ws > tiny, 1.0 / np.maximum(ws, tiny), 1.0).astype(np.float32)
            inverse_transform = inverse_transform * jnp.asarray(inv_ws)[None, None, :]
            inverse_transform = inverse_transform * (float(L) / hop)

        half = L // 2
        return inverse_transform[:, :, half:-half]

    # ---------------- public API (torch-module layout) ----------------
    def transform(self, input_data, return_phase=True, filter_pad=True):
        C = self.cutoff
        real_p, imag_p, mag_p, B, T, _ = self._forward(input_data, emit_mag=True,
                                                       filter_pad=filter_pad)
        magnitude = jnp.transpose(mag_p[:, :T, :C], (0, 2, 1))       # (B, C, T)
        phase = None
        if return_phase:
            # TODO(synk): fuse atan2 into the forward kernel once Mosaic exposes a
            # lowering for lax.atan2; computed here in plain JAX on the (B,T,C) slice.
            phase = jnp.transpose(
                jnp.arctan2(imag_p[:, :T, :C].astype(jnp.float32),
                            real_p[:, :T, :C].astype(jnp.float32)), (0, 2, 1))
        return magnitude, phase

    def inverse(self, magnitude, phase):
        C, Np = self.cutoff, self._Np
        B, _, T = magnitude.shape
        min_steps = 1 if B >= 2 else 2
        tile_t = _choose_tile(T, self._tile_step, self._max_tile, min_steps)
        Tp = _round_up(T, tile_t)

        def pack(a):  # (B, C, T) -> padded (B, Tp, Np) f32
            a = jnp.transpose(a, (0, 2, 1)).astype(jnp.float32)
            return jnp.pad(a, ((0, 0), (0, Tp - T), (0, Np - C)))

        contrib = self._inverse_matmul(pack(magnitude), pack(phase), tile_t, from_ri=False)
        return self._finish_inverse(contrib[:, :T], B, T)

    def __call__(self, input_data):
        # Fast path: real/imag stay in the padded (B, Tp, Np) bf16 layout end-to-end and
        # feed the inverse matmul directly (no mag/phase/cos/sin round trip, no atan2 pass).
        real_p, imag_p, _, B, T, tile_t = self._forward(input_data, emit_mag=False)
        self._fwd_cache = (real_p, imag_p, B, T)
        self._mag = None
        self._ph = None
        contrib = self._inverse_matmul(real_p, imag_p, tile_t, from_ri=True)
        return self._finish_inverse(contrib[:, :T], B, T)

    # magnitude/phase of the last __call__ are computed lazily (only if accessed).
    @property
    def magnitude(self):
        if self._mag is None and self._fwd_cache is not None:
            r, i, B, T = self._fwd_cache
            C = self.cutoff
            rr = r[:, :T, :C].astype(jnp.float32)
            ii = i[:, :T, :C].astype(jnp.float32)
            self._mag = jnp.transpose(jnp.sqrt(rr * rr + ii * ii), (0, 2, 1))
        return self._mag

    @property
    def phase(self):
        if self._ph is None and self._fwd_cache is not None:
            r, i, B, T = self._fwd_cache
            C = self.cutoff
            self._ph = jnp.transpose(
                jnp.arctan2(i[:, :T, :C].astype(jnp.float32),
                            r[:, :T, :C].astype(jnp.float32)), (0, 2, 1))
        return self._ph


# ----------------------------- main -----------------------------

if __name__ == "__main__":
    key = jax.random.PRNGKey(0)
    B, S = 2, 256
    x = jax.random.normal(key, (B, S), dtype=jnp.float32)

    stft = STFTPallas(filter_length=64, hop_length=16, win_length=64, window="hann",
                      use_pallas=True)

    # Fast path: STFT -> ISTFT reconstruction (real/imag fed straight to the inverse).
    recon = jax.block_until_ready(stft(x))
    assert recon.shape == (B, 1, S), recon.shape
    assert bool(jnp.all(jnp.isfinite(recon)))

    # Public transform()/inverse() API (mag/phase path, cos/sin inside the inverse kernel).
    mag, ph = stft.transform(x)
    expected_T = S // stft.hop_length + 1
    assert mag.shape == (B, stft.cutoff, expected_T), mag.shape
    assert ph.shape == (B, stft.cutoff, expected_T), ph.shape
    rec2 = jax.block_until_ready(stft.inverse(mag, ph))
    assert rec2.shape == (B, 1, S), rec2.shape
    assert bool(jnp.all(jnp.isfinite(rec2)))
    err_mp = float(jnp.max(jnp.abs(rec2[:, 0, :] - x)))
    assert err_mp < 2e-1, f"mag/phase round-trip error too large: {err_mp}"

    # (1) Tight consistency check vs identical math with plain-JAX (bf16 MXU) matmuls.
    stft_ref = STFTPallas(filter_length=64, hop_length=16, win_length=64, window="hann",
                          use_pallas=False)
    recon_ref = jax.block_until_ready(stft_ref(x))
    err_ref = float(jnp.max(jnp.abs(recon - recon_ref)))
    assert err_ref < 5e-3, f"pallas vs jax reference mismatch: {err_ref}"

    # (2) Loose round-trip check: STFT -> ISTFT should reconstruct the input (bf16 matmuls).
    err_rt = float(jnp.max(jnp.abs(recon[:, 0, :] - x)))
    assert err_rt < 1e-1, f"round-trip reconstruction error too large: {err_rt}"

    print("KERNEL_OK")
</pallas_src>

<mosaic_0001>
module attributes {stable_mosaic.version = 11 : i64} {
  func.func @kernel(%arg0: i32, %arg1: i32, %arg2: memref<1x32x16xbf16, #tpu.memory_space<vmem>>, %arg3: memref<1x16x16xbf16, #tpu.memory_space<vmem>>, %arg4: memref<64x256xbf16, #tpu.memory_space<vmem>>, %arg5: memref<1x32x128xbf16, #tpu.memory_space<vmem>>, %arg6: memref<1x32x128xbf16, #tpu.memory_space<vmem>>) attributes {dimension_semantics = [#tpu.dimension_semantics<parallel>, #tpu.dimension_semantics<parallel>], iteration_bounds = array<i64: 2, 1>, scalar_prefetch = 0 : i64, scratch_operands = 0 : i64, tpu.core_type = #tpu.core_type<tc>, window_params = [{transform_indices = @transform_0, window_bounds = array<i64: 1, 32, 16>}, {transform_indices = @transform_1, window_bounds = array<i64: 1, 16, 16>}, {pipeline_mode = #tpu.pipeline_mode<synchronous>, transform_indices = @transform_2, window_bounds = array<i64: 64, 256>}, {transform_indices = @transform_3, window_bounds = array<i64: 1, 32, 128>}, {transform_indices = @transform_4, window_bounds = array<i64: 1, 32, 128>}]} {
    %c0 = arith.constant 0 : index
    %c0_0 = arith.constant 0 : index
    %c0_1 = arith.constant 0 : index
    %0 = vector.load %arg2[%c0, %c0_0, %c0_1] : memref<1x32x16xbf16, #tpu.memory_space<vmem>>, vector<1x32x16xbf16>
    %1 = vector.shape_cast %0 : vector<1x32x16xbf16> to vector<32x16xbf16>
    %c0_2 = arith.constant 0 : index
    %c0_3 = arith.constant 0 : index
    %c0_4 = arith.constant 0 : index
    %2 = vector.load %arg3[%c0_2, %c0_3, %c0_4] : memref<1x16x16xbf16, #tpu.memory_space<vmem>>, vector<1x16x16xbf16>
    %3 = vector.shape_cast %2 : vector<1x16x16xbf16> to vector<16x16xbf16>
    %4 = tpu.concatenate %1, %3 in 0 : vector<32x16xbf16>, vector<16x16xbf16> -> vector<48x16xbf16>
    %5 = vector.extract_strided_slice %4 {offsets = [0, 0], sizes = [32, 16], strides = [1, 1]} : vector<48x16xbf16> to vector<32x16xbf16>
    %6 = vector.extract_strided_slice %4 {offsets = [1, 0], sizes = [32, 16], strides = [1, 1]} : vector<48x16xbf16> to vector<32x16xbf16>
    %7 = vector.extract_strided_slice %4 {offsets = [2, 0], sizes = [32, 16], strides = [1, 1]} : vector<48x16xbf16> to vector<32x16xbf16>
    %8 = vector.extract_strided_slice %4 {offsets = [3, 0], sizes = [32, 16], strides = [1, 1]} : vector<48x16xbf16> to vector<32x16xbf16>
    %9 = tpu.concatenate %5, %6, %7, %8 in 1 : vector<32x16xbf16>, vector<32x16xbf16>, vector<32x16xbf16>, vector<32x16xbf16> -> vector<32x64xbf16>
    %c0_5 = arith.constant 0 : index
    %c0_6 = arith.constant 0 : index
    %10 = vector.load %arg4[%c0_5, %c0_6] : memref<64x256xbf16, #tpu.memory_space<vmem>>, vector<64x256xbf16>
    %cst = arith.constant dense<0.000000e+00> : vector<32x256xf32>
    %11 = tpu.matmul %9, %10, %cst {dimension_numbers = #tpu.dot_dimension_numbers<[1], [0], [0], [1], [0, 0, 1, 1], [], []>} : vector<32x64xbf16>, vector<64x256xbf16>, vector<32x256xf32> -> vector<32x256xf32>
    %12 = vector.extract_strided_slice %11 {offsets = [0, 0], sizes = [32, 128], strides = [1, 1]} : vector<32x256xf32> to vector<32x128xf32>
    %13 = vector.extract_strided_slice %11 {offsets = [0, 128], sizes = [32, 128], strides = [1, 1]} : vector<32x256xf32> to vector<32x128xf32>
    %14 = arith.truncf %12 : vector<32x128xf32> to vector<32x128xbf16>
    %c0_7 = arith.constant 0 : index
    %c0_8 = arith.constant 0 : index
    %c0_9 = arith.constant 0 : index
    %15 = vector.load %arg5[%c0_7, %c0_8, %c0_9] : memref<1x32x128xbf16, #tpu.memory_space<vmem>>, vector<1x32x128xbf16>
    %16 = vector.shape_cast %15 : vector<1x32x128xbf16> to vector<32x128xbf16>
    %17 = vector.shape_cast %14 : vector<32x128xbf16> to vector<1x32x128xbf16>
    tpu.vector_store %arg5[%c0_7, %c0_8, %c0_9], %17 {strides = array<i32>} : memref<1x32x128xbf16, #tpu.memory_space<vmem>>, vector<1x32x128xbf16>,
    %18 = arith.truncf %13 : vector<32x128xf32> to vector<32x128xbf16>
    %c0_10 = arith.constant 0 : index
    %c0_11 = arith.constant 0 : index
    %c0_12 = arith.constant 0 : index
    %19 = vector.load %arg6[%c0_10, %c0_11, %c0_12] : memref<1x32x128xbf16, #tpu.memory_space<vmem>>, vector<1x32x128xbf16>
    %20 = vector.shape_cast %19 : vector<1x32x128xbf16> to vector<32x128xbf16>
    %21 = vector.shape_cast %18 : vector<32x128xbf16> to vector<1x32x128xbf16>
    tpu.vector_store %arg6[%c0_10, %c0_11, %c0_12], %21 {strides = array<i32>} : memref<1x32x128xbf16, #tpu.memory_space<vmem>>, vector<1x32x128xbf16>,
    return
  }
  func.func @transform_0(%arg0: i32, %arg1: i32) -> (i32, i32, i32) {
    %c0_i32 = arith.constant 0 : i32
    %c0_i32_0 = arith.constant 0 : i32
    return %arg0, %arg1, %c0_i32 : i32, i32, i32
  }
  func.func @transform_1(%arg0: i32, %arg1: i32) -> (i32, i32, i32) {
    %c1_i32 = arith.constant 1 : i32
    %0 = arith.addi %arg1, %c1_i32 : i32
    %c2_i32 = arith.constant 2 : i32
    %1 = arith.muli %0, %c2_i32 : i32
    %c0_i32 = arith.constant 0 : i32
    %c0_i32_0 = arith.constant 0 : i32
    return %arg0, %1, %c0_i32 : i32, i32, i32
  }
  func.func @transform_2(%arg0: i32, %arg1: i32) -> (i32, i32) {
    %c0_i32 = arith.constant 0 : i32
    %c0_i32_0 = arith.constant 0 : i32
    %c0_i32_1 = arith.constant 0 : i32
    return %c0_i32, %c0_i32_0 : i32, i32
  }
  func.func @transform_3(%arg0: i32, %arg1: i32) -> (i32, i32, i32) {
    %c0_i32 = arith.constant 0 : i32
    %c0_i32_0 = arith.constant 0 : i32
    return %arg0, %arg1, %c0_i32 : i32, i32, i32
  }
  func.func @transform_4(%arg0: i32, %arg1: i32) -> (i32, i32, i32) {
    %c0_i32 = arith.constant 0 : i32
    %c0_i32_0 = arith.constant 0 : i32
    return %arg0, %arg1, %c0_i32 : i32, i32, i32
  }
}

</mosaic_0001>

<bundles_post_ra>
// kernel: tpu_custom_call.1
= control target key start
LH: loop header
LB: loop body
LE: loop exit
PB: predicated region body
PF: predicated region fallthrough
CT: control target
= control target key end

     0   :  { %10 = vsyncpa [#allocation3], 0  ;;  %s1227_s0 = inlined_call_operand.vmem [shape: bf16[2,48,16], index: 0, kind: input, shape index: {}]   ;;  %s1228_s1 = inlined_call_operand.vmem [shape: bf16[2,48,16], index: 1, kind: input, shape index: {}]   ;;  %s1229_s2 = inlined_call_operand.vmem [shape: bf16[64,256], index: 2, kind: input, shape index: {}]   ;;  %s1230_s3 = inlined_call_operand.hbm [shape: bf16[2,32,128], index: 3, kind: output, shape index: {0}]   ;;  %s1231_s4 = inlined_call_operand.hbm [shape: bf16[2,32,128], index: 4, kind: output, shape index: {1}]  }
   0x1   :  { %12 = vsyncpa [#allocation3 + $0x1], 0 }
   0x2   :  { %13 = vsyncpa [#allocation5], 0 }
   0x3   :  { %15 = vsyncpa [#allocation5 + $0x1], 0  ;;  %s1027_s15 = smov 0   ;;  %s1029_s16 = smov 0  }
   0x4   :  { %s1031_s17 = smov 0   ;;  %s1033_s18 = smov 0  }
   0x5   :  { %s1035_s19 = smov 0   ;;  %s1037_s20 = smov 0  }
   0x6 LB: > { %s718_s21 = sadd.s32 4294967295, %s992_s20   ;;  %s719_s22 = sadd.s32 4294967294, %s992_s20   ;;  %s992_s20 = sphi %s1037_s20, %s21_s20   ;;  %s988_s19 = sphi %s1035_s19, %s1238_s19   ;;  %s984_s18 = sphi %s1033_s18, %s1237_s18   ;;  %s980_s17 = sphi %s1031_s17, %s1236_s17   ;;  %s976_s16 = sphi %s1029_s16, %s1235_s16   ;;  %s972_s15 = sphi %s1027_s15, %s1234_s15  }
   0x7   : > { %s33_s23 = sadd.s32 1, %s988_s19  ;;  %s123_s24 = sadd.s32 1, %s980_s17 }
   0x8   : > { %p35_p0 = scmp.ge.s32.totalorder %s33_s23, 2  ;;  %p133_p1 = scmp.ne.s32.totalorder %s980_s17, %s976_s16 }
   0x9   : > { %p134_p2 = scmp.eq.s32.totalorder %s718_s21, 1  ;;  %p139_p3 = scmp.ne.s32.totalorder %s976_s16, %s972_s15 }
   0xa   : > { %s1240_s23 = smov (%p35_p0, %s33_s23), 0  ;;  %p140_p5 = scmp.eq.s32.totalorder %s719_s22, 1 }
   0xb   : > { %p1067_p4 = por %p134_p2, %p133_p1  ;;  %s118_s26 = ssub.s32 %s988_s19, %s1240_s23 }
   0xc   : > { %p722_p6 = scmp.ge.s32.totalorder %s992_s20, 1  ;;  %p121_p7 = scmp.eq.s32.totalorder %s118_s26, 0 }
   0xd   : > { %p1074_p8 = por %p140_p5, %p139_p3  ;;  %p227_p9 = scmp.lt.s32.totalorder %s992_s20, 3 }
   0xe   : > { %s1080_s28 = scalar_select %p121_p7, %s980_s17, %s123_s24  }
   0xf   : > { %p228_p10 = pnand %p722_p6, %p227_p9 }
  0x10   : > { %p282_p11 = scmp.lt.s32.totalorder (!%p228_p10), %s984_s18, 1  ;;  %v870_v0 = vld [vmem:[%s1229_s2 + $0x4] ss:$8 sps:$4 sm:$0xff] (!%p228_p10)   ;;  %v872_v1 = vld [vmem:[%s1229_s2] ss:$8 sps:$4 sm:$0xff] (!%p228_p10)   ;;  %vm358_vm0 = vcmask (!%p228_p10), 1046528  }
  0x11   : > { %231 = sbr.rel (%p228_p10) target bundleno = 416 (0x1a0), region = 32  ;;  %v873_v2 = vld [vmem:[%s1229_s2 + $0x14] ss:$8 sps:$4 sm:$0xff] (!%p228_p10)   ;;  %790 = vmatprep.subr.bf16.mxu1 (!%p228_p10), %v870_v0  ;;  %454 = vmatprep.subr.bf16.mxu0 (!%p228_p10), %v870_v0  ;;  %v875_v3 = vld [vmem:[%s1229_s2 + $0x10] ss:$8 sps:$4 sm:$0xff] (!%p228_p10)   ;;  %v994_v18 = vmov (!%p228_p10), 0  }
  0x12   : > { %794 = vmatpush1.bf16.msra.mxu1 (!%p228_p10), %v872_v1  ;;  %455 = vmatpush1.bf16.msra.mxu0 (!%p228_p10), %v872_v1  ;;  %v876_v4 = vld [vmem:[%s1229_s2 + $0x24] ss:$8 sps:$4 sm:$0xff] (!%p228_p10)   ;;  %v878_v5 = vld [vmem:[%s1229_s2 + $0x20] ss:$8 sps:$4 sm:$0xff] (!%p228_p10)   ;;  %vm333_vm1 = vsmask.f32 (!%p228_p10), 7424 }
  0x13   : > { %791 = vmatprep.subr.bf16.mxu1 (!%p228_p10), %v873_v2  ;;  %456 = vmatprep.subr.bf16.mxu0 (!%p228_p10), %v873_v2  ;;  %v879_v13 = vld [vmem:[%s1229_s2 + $0x34] ss:$8 sps:$4 sm:$0xff] (!%p228_p10)   ;;  %v881_v31 = vld [vmem:[%s1229_s2 + $0x30] ss:$8 sps:$4 sm:$0xff] (!%p228_p10)   ;;  %vm368_vm2 = vsmask.f32 (!%p228_p10), 6400 }
  0x14   : > { %496 = vmatprep.mubr.bf16.mxu1 (!%p228_p10), %v994_v18  ;;  %486 = vmatprep.mubr.bf16.mxu0 (!%p228_p10), %v994_v18  ;;  %s996_s13 = smov (!%p228_p10), 16   ;;  %s997_s14 = smov (!%p228_p10), 48   ;;  %vm386_vm3 = vcmask (!%p228_p10), 130048   ;;  %vm396_vm4 = vcmask (!%p228_p10), 392192   ;;  %vm391_vm5 = vcmask (!%p228_p10), 261120   ;;  %vm449_vm6 = vcmask (!%p228_p10), 523264  }
  0x16   : > { %795 = vmatpush1.bf16.msra.mxu1 (!%p228_p10), %v875_v3  ;;  %457 = vmatpush1.bf16.msra.mxu0 (!%p228_p10), %v875_v3 }
  0x17   : > { %792 = vmatprep.subr.bf16.mxu1 (!%p228_p10), %v876_v4  ;;  %458 = vmatprep.subr.bf16.mxu0 (!%p228_p10), %v876_v4 }
  0x18   : > { %s283_s29 = scalar_select %p282_p11, %s984_s18, 1 }
  0x1a   : > { %s798_s10 = smul.u32 24, %s283_s29  ;;  %796 = vmatpush1.bf16.msra.mxu1 %v878_v5  ;;  %459 = vmatpush1.bf16.msra.mxu0 %v878_v5  ;;  %s766_s29 = sshll.u32 %s984_s18, 8 }
  0x1b   : > { %793 = vmatprep.subr.bf16.mxu1 %v879_v13  ;;  %460 = vmatprep.subr.bf16.mxu0 %v879_v13  ;;  %s1142_s8 = scalar_lea.hbm %s1230_s3, %s766_s29 }
  0x1c   : > { %s289_s21 = scalar_lea.vmem %s1227_s0, %s798_s10  ;;  %s757_s22 = sadd.s32 16, %s798_s10 }
  0x1d   : > { %s305_s5 = scalar_lea.vmem %s1228_s1, %s757_s22  ;;  %v1108_v6 = vld [vmem:[%s289_s21] sm:$0xff]   ;;  %v1110_v7 = vld [vmem:[%s289_s21 + $0x8] sm:$0xff]   ;;  %s995_s10 = smov 32  }
  0x1e   : > { %v869_v8 = vld [vmem:[%s305_s5] sm:$0xff]   ;;  %v359_v9 = vrot.slane %v1108_v6, 1  ;;  %v360_v10 = vrot.slane %v1110_v7, 1  ;;  %v335_v11 = vshrl.u32 %v1108_v6, 16  ;;  %v337_v12 = vshll.u32 %v1108_v6, 16  ;;  %797 = vmatpush1.bf16.msra.mxu1 %v881_v31  ;;  %461 = vmatpush1.bf16.msra.mxu0 %v881_v31  ;;  %s1133_s21 = sand.u32 1, %s976_s16  }
  0x1f   : > { %v342_v14 = vshll.u32 %v1110_v7, 16  ;;  %v362_v15 = vrot.slane %v869_v8, 1  ;;  %v346_v16 = vshrl.u32 %v1110_v7, 16  ;;  %v350_v17 = vshll.u32 %v869_v8, 16  ;;  %s723_s22 = sshll.u32 %s1133_s21, 4  ;;  %s548_s11 = scalar_lea.sflag [#allocation3], %s1133_s21 }
  0x20   : > { %v361_v19 = vsel %vm358_vm0, %v359_v9, %v360_v10  ;;  %v339_v20 = vrot.slane %v337_v12, 1  ;;  %v376_v21 = vshrl.u32 %v869_v8, 16  ;;  %v369_v22 = vrot.slane %v335_v11, 1  ;;  %s269_s24 = scalar_lea.vmem [#allocation2], %s723_s22  ;;  %s276_s30 = scalar_lea.vmem [#allocation4], %s723_s22 }
  0x21   : > { %364 = vrot.lane.b32.xlu1 %v361_v19, %s995_s10  ;;  %v344_v23 = vrot.slane %v342_v14, 1  ;;  %v363_v24 = vsel %vm358_vm0, %v360_v10, %v362_v15  ;;  %v352_v25 = vrot.slane %v350_v17, 1  ;;  %v372_v26 = vrot.slane %v346_v16, 1  ;;  %s568_s26 = sshll.u32 %s269_s24, 4  ;;  %s586_s5 = sshll.u32 %s276_s30, 4  ;;  %s1137_s26 = int_to_ptr.vmem [resolvable:$true] %s568_s26  ;;  %s1144_s5 = int_to_ptr.vmem [resolvable:$true] %s586_s5 }
  0x22   : > { %v340_v27 = vor.u32 %v339_v20, %v335_v11  ;;  %v373_v28 = vrot.slane %v342_v14, 2  ;;  %v378_v29 = vrot.slane %v376_v21, 1  ;;  %v379_v30 = vrot.slane %v350_v17, 2  ;;  %s882_s12 = scalar_lea.vmem %s1137_s26, 256 }
  0x23   : > { %v348_v32 = vor.u32 %v346_v16, %v344_v23  ;;  %v370_v33 = vrot.slane %v337_v12, 2  ;;  %p883_p12 = scmp.ne.s32.totalorder %s1137_s26, %s882_s12 }
  0x24   : > { %v345_v34 = vsel %vm333_vm1, %v340_v27, %v344_v23  ;;  %v374_v35 = vor.u32 %v373_v28, %v372_v26  ;;  %v380_v36 = vor.u32 %v379_v30, %v378_v29 }
  0x25   : > { %354 = vrot.lane.b32.xlu0 %v345_v34, %s996_s13  ;;  %366 = vrot.lane.b32.xlu1 %v363_v24, %s995_s10  ;;  %v353_v37 = vsel %vm333_vm1, %v348_v32, %v352_v25  ;;  %v371_v39 = vor.u32 %v370_v33, %v369_v22  ;;  %s1149_s10 = scalar_lea.hbm %s1231_s4, %s766_s29  ;;  %p884_p13 = pnand %p883_p12, %p1067_p4 }
  0x26   : > { %v381_v38 = vsel %vm368_vm2, %v374_v35, %v380_v36 }
  0x27   : > { %v375_v40 = vsel %vm368_vm2, %v371_v39, %v374_v35  ;;  %p885_p0 = pneg %p884_p13 }
  0x29   : > { %356 = vrot.lane.b32.xlu0 %v353_v37, %s996_s13  ;;  %384 = vrot.lane.b32.xlu1 %v381_v38, %s997_s14  ;;  %s998_s13 = smov [#allocation2]  }
  0x2d   : > { %382 = vrot.lane.b32.xlu0 %v375_v40, %s997_s14  ;;  %s886_s14 = sshll.u32 %s998_s13, 4  ;;  %s887_s14 = int_to_ptr.vmem [resolvable:$false] %s886_s14 }
  0x2e   : > { %s888_s22 = scalar_lea.vmem %s887_s14, 512  ;;  %p889_p1 = scmp.lt.s32.totalorder %s1137_s26, %s887_s14 }
  0x2f   : > { %p890_p2 = scmp.lt.s32.totalorder %s888_s22, %s882_s12 }
  0x31   : > { %p891_p3 = por %p890_p2, %p889_p1 }
  0x33   : > { %p892_p5 = pnand %p891_p3, %p885_p0 }
  0x93   : > { %v365_v41 = vpop.permute.xlu1 %364 }
  0x97   : > { %v355_v42 = vpop.permute.xlu0 %354  ;;  %v367_v43 = vpop.permute.xlu1 %366 }
  0x98   : > { %v388_v46 = vsel %vm386_vm3, %v1108_v6, %v355_v42 }
  0x99   : > { %v393_v50 = vsel %vm391_vm5, %v388_v46, %v365_v41 }
  0x9b   : > { %v357_v44 = vpop.permute.xlu0 %356  ;;  %v385_v45 = vpop.permute.xlu1 %384 }
  0x9c   : > { %v390_v47 = vsel %vm386_vm3, %v1110_v7, %v357_v44 }
  0x9d   : > { %v395_v48 = vsel %vm391_vm5, %v390_v47, %v367_v43 }
  0x9e   : > { %v400_v49 = vsel %vm396_vm4, %v395_v48, %v385_v45 }
  0x9f   : > { %739 = vmatmul.mubr.msk.bf16.vlgmr.msra.gmra.mrb[0].mxu1 %vm449_vm6, %v400_v49  ;;  %v383_v51 = vpop.permute.xlu0 %382 }
  0xa0   : > { %v398_v52 = vsel %vm396_vm4, %v393_v50, %v383_v51 }
  0xa1   : > { %738 = vmatmul.mubr.msk.bf16.vlgmr.msra.gmra.mrb[0].mxu0 %vm449_vm6, %v398_v52 }
 0x172   : > { %v498_v53 = vpop.f32.mrb[0].mxu1 }
 0x173   : > { %v500_v54 = vpop.f32.mrb[1].mxu1 }
 0x174   : > { %v488_v55 = vpop.f32.mrb[0].mxu0  ;;  %v502_v56 = vpop.f32.mrb[2].mxu1 }
 0x175   : > { %v776_v57 = vpack.c.bf16 %v502_v56, %v498_v53  ;;  %v490_v58 = vpop.f32.mrb[1].mxu0  ;;  %v504_v59 = vpop.f32.mrb[3].mxu1 }
 0x176   : > { %v786_v60 = vpack.c.bf16 %v504_v59, %v500_v54  ;;  %v492_v61 = vpop.f32.mrb[2].mxu0 }
 0x177   : > { %788 = vst [vmem:[%s269_s24 + $0x8] sm:$0xff] %v776_v57   ;;  %v771_v62 = vpack.c.bf16 %v492_v61, %v488_v55  ;;  %v494_v63 = vpop.f32.mrb[3].mxu0 }
 0x178   : > { %789 = vst [vmem:[%s276_s30 + $0x8] sm:$0xff] %v786_v60   ;;  %v781_v0 = vpack.c.bf16 %v494_v63, %v490_v58 }
 0x179   : > { %772 = vst [vmem:[%s269_s24] sm:$0xff] %v771_v62  }
 0x17a   : > { %782 = vst [vmem:[%s276_s30] sm:$0xff] %v781_v0  }
 0x17b   : > { %895 = shalt.err (!%p892_p5)
}
 0x17c   : > { %s896_s24 = scalar_lea.hbm %s1142_s8, 256  ;;  %s900_s6 = scalar_lea.hbm %s1230_s3, 512 }
 0x17d   : > { %p897_p6 = scmp.ne.s32.totalorder %s1142_s8, %s896_s24  ;;  %p901_p10 = scmp.lt.u32.totalorder %s1142_s8, %s1230_s3 }
 0x17e   : > { %p902_p11 = scmp.lt.u32.totalorder %s900_s6, %s896_s24  ;;  %p904_p13 = scmp.lt.u32.totalorder %s896_s24, %s1142_s8 }
 0x17f   : > { %p898_p7 = pnand %p897_p6, %p1067_p4 }
 0x180   : > { %p903_p12 = por %p902_p11, %p901_p10 }
 0x181   : > { %p899_p9 = pneg %p898_p7 }
 0x182   : > { %p905_p0 = por %p904_p13, %p903_p12 }
 0x184   : > { %p906_p1 = pnand %p905_p0, %p899_p9 }
 0x186   : > { %909 = shalt.err (!%p906_p1)
}
 0x187   : > { %s999_s9 = smov 64   ;;  %s1000_s12 = smov 4  }
 0x188   : > { %800 = dma.vmem_to_hbm [thread:$0]  (%p1067_p4), %s1137_s26, 256, %s1142_s8, %s548_s11, %s999_s9, %s999_s9, %s1000_s12  }
 0x189   : > { %s553_s13 = scalar_lea.sflag [#allocation5], %s1133_s21  ;;  %s910_s14 = scalar_lea.vmem %s1144_s5, 256 }
 0x18a   : > { %p911_p2 = scmp.ne.s32.totalorder %s1144_s5, %s910_s14  ;;  %s1001_s22 = smov [#allocation4]  }
 0x18b   : > { %s914_s24 = sshll.u32 %s1001_s22, 4  ;;  %s915_s24 = int_to_ptr.vmem [resolvable:$false] %s914_s24 }
 0x18c   : > { %p912_p3 = pnand %p911_p2, %p1067_p4  ;;  %s916_s29 = scalar_lea.vmem %s915_s24, 512 }
 0x18d   : > { %p917_p6 = scmp.lt.s32.totalorder %s1144_s5, %s915_s24  ;;  %p918_p7 = scmp.lt.s32.totalorder %s916_s29, %s910_s14 }
 0x18e   : > { %p913_p5 = pneg %p912_p3 }
 0x18f   : > { %p919_p9 = por %p918_p7, %p917_p6 }
 0x191   : > { %p920_p10 = pnand %p919_p9, %p913_p5 }
 0x193   : > { %923 = shalt.err (!%p920_p10)
}
 0x194   : > { %s924_s26 = scalar_lea.hbm %s1149_s10, 256  ;;  %s928_s30 = scalar_lea.hbm %s1231_s4, 512 }
 0x195   : > { %p925_p11 = scmp.ne.s32.totalorder %s1149_s10, %s924_s26  ;;  %p929_p0 = scmp.lt.u32.totalorder %s1149_s10, %s1231_s4 }
 0x196   : > { %p930_p1 = scmp.lt.u32.totalorder %s928_s30, %s924_s26  ;;  %p932_p3 = scmp.lt.u32.totalorder %s924_s26, %s1149_s10 }
 0x197   : > { %p926_p12 = pnand %p925_p11, %p1067_p4 }
 0x198   : > { %p931_p2 = por %p930_p1, %p929_p0 }
 0x199   : > { %p927_p13 = pneg %p926_p12 }
 0x19a   : > { %p933_p5 = por %p932_p3, %p931_p2 }
 0x19c   : > { %p934_p6 = pnand %p933_p5, %p927_p13 }
 0x19e   : > { %937 = shalt.err (!%p934_p6)
}
 0x19f   : > { %801 = dma.vmem_to_hbm [thread:$0]  (%p1067_p4), %s1144_s5, 256, %s1149_s10, %s553_s13, %s999_s9, %s999_s9, %s1000_s12  }
 0x1a0 PF: > { %p812_p7 = scmp.ge.s32.totalorder %s992_s20, 2  ;;  %s601_s18 = sand.u32 1, %s972_s15  }
 0x1a1   : > { %s602_s14 = scalar_lea.sflag [#allocation3], %s601_s18 }
 0x1a2   : > { %p805_p9 = pnand %p812_p7, %p1074_p8 }
 0x1a4   : > { %963 = dma.done.wait (!%p805_p9), %s602_s14, 256  }
 0x1a5   : > { %965 = vsyncadd (!%p805_p9), %s602_s14, 4294967040  ;;  %s611_s25 = scalar_lea.sflag [#allocation5], %s601_s18 }
 0x1a6   : > { %967 = dma.done.wait (!%p805_p9), %s611_s25, 256  }
 0x1a7   : > { %969 = vsyncadd (!%p805_p9), %s611_s25, 4294967040  ;;  %s21_s20 = sadd.s32 1, %s992_s20   ;;  %s1234_s15 = smov %s976_s16 }
 0x1a8   : > { %p18_p10 = scmp.ge.s32.totalorder %s21_s20, 4   ;;  %s1235_s16 = smov %s980_s17 }
 0x1a9   : > { %s1236_s17 = smov %s1080_s28  ;;  %s1237_s18 = smov %s988_s19 }
 0x1aa   : > { %s1238_s19 = smov %s1240_s23  ;;  %20 = sbr.rel (!%p18_p10) target bundleno = 6 (0x6), region = 87 }
 0x1b1   :  { %616 = vsyncpa [#allocation3], 1 }
 0x1b2   :  { %618 = vsyncpa [#allocation3 + $0x1], 1 }
 0x1b3   :  { %619 = vsyncpa [#allocation5], 1 }
 0x1b4   :  { %621 = vsyncpa [#allocation5 + $0x1], 1 }

</bundles_post_ra>
